<compile_context>
chip_gen: v7x
topology: tpu7x:2x2x1
jax: 0.10.0
libtpu: 0.0.40
codegen_flags: <defaults>
</compile_context>

<pallas_src>
import functools

import jax
import jax.numpy as jnp
from jax.experimental import pallas as pl
from jax.experimental.pallas import tpu as pltpu


def _round_up(x, m):
    return pl.cdiv(x, m) * m


def _dirsim_kernel(x_ref, w_ref, out_ref, acc_ref):
    """Grid = (K // tk,): K-tiled block-diagonal projection + fused epilogue.

    x_ref   : [4B, tk] bf16  rows = [img1; img2; txt1; txt2] (block-diagonal
                              vs. the stacked weight, K-tile of Fi+E)
    w_ref   : [tk, D]  bf16  K-tile of [w_img ; w_txt]
    out_ref : [B, 1]   f32   directional cosine similarity
    acc_ref : [4B, D]  f32   VMEM accumulator for all four feature rows
    """
    k = pl.program_id(0)

    @pl.when(k == 0)
    def _init():
        acc_ref[...] = jnp.zeros_like(acc_ref)

    # One MXU matmul per K-tile for ALL four features (bf16 in, f32 acc).
    acc_ref[...] += jnp.dot(x_ref[...], w_ref[...],
                            preferred_element_type=jnp.float32)

    @pl.when(k == pl.num_programs(0) - 1)
    def _finalize():
        B = out_ref.shape[0]
        eps = jnp.float32(1e-8)

        feats = acc_ref[...]                                     # [4B, D] f32
        # L2 normalization of every feature row at once:
        # feat * rsqrt(sum(feat^2)) -- rsqrt runs on the EUP.  No epsilon,
        # matching the PyTorch reference `feat / feat.norm()` (an all-zero
        # feature row would produce Inf/NaN there too).
        fn = feats * jax.lax.rsqrt(
            jnp.sum(feats * feats, axis=1, keepdims=True))

        d_img = fn[B:2 * B, :] - fn[0:B, :]                       # [B, D]
        d_txt = fn[3 * B:4 * B, :] - fn[2 * B:3 * B, :]           # [B, D]

        # One batched cross-lane reduction for <a,b>, |a|^2, |b|^2.
        prods = jnp.concatenate(
            [d_img * d_txt, d_img * d_img, d_txt * d_txt], axis=0)  # [3B, D]
        sums = jnp.sum(prods, axis=1, keepdims=True)                # [3B, 1]

        num = sums[:B, :]
        # F.cosine_similarity clamps each norm to eps; equivalently clamp the
        # squared norms to eps^2 and use a single EUP rsqrt for 1/(|a||b|).
        na2 = jnp.maximum(sums[B:2 * B, :], eps * eps)
        nb2 = jnp.maximum(sums[2 * B:, :], eps * eps)
        out_ref[...] = (num * jax.lax.rsqrt(na2 * nb2)).astype(out_ref.dtype)


def prepare_params(tok_embed_table, w_img, w_txt, *,
                   max_tk=8192, weight_vmem_budget_bytes=24 << 20):
    """One-time parameter prep (outside the hot path).

    Casts the projection weights to bf16, stacks them along K and zero-pads
    the K axis to a multiple of the chosen K-tile.  Zero padding is exact
    (zero rows contribute nothing to the projection).  Doing this once avoids
    a full HBM read+write of the weight on every forward call.
    """
    Fi, D = w_img.shape
    E = w_txt.shape[0]
    assert w_txt.shape[1] == D
    k_total = Fi + E

    # K-tile: multiple of 512 (satisfies the lane/sublane divisibility rules),
    # capped by (a) max_tk, (b) the double-buffered weight VMEM budget,
    # (c) round_up(K, 512) so tiny problems collapse to a single grid step.
    per_k_weight_bytes = 2 * D * 2            # bf16, double-buffered
    budget_cap = max(512,
                     (weight_vmem_budget_bytes // per_k_weight_bytes)
                     // 512 * 512)
    tk = int(min(max_tk, budget_cap, _round_up(k_total, 512)))
    k_pad = int(_round_up(k_total, tk))

    w_cat = jnp.concatenate([w_img.astype(jnp.bfloat16),
                             w_txt.astype(jnp.bfloat16)], axis=0)   # [K, D]
    w_cat = jnp.pad(w_cat, ((0, k_pad - k_total), (0, 0)))          # [Kp, D]

    return dict(
        w=w_cat,
        tok_embed=tok_embed_table.astype(jnp.float32),
        Fi=Fi, E=E, D=D, tk=tk, k_pad=k_pad,
    )


@functools.partial(jax.jit, static_argnames=())
def _nothing(x):  # placeholder to keep jit imports honest (unused)
    return x


def directional_similarity(image_one, image_two,
                           caption_ids_one, caption_ids_two, params):
    """Wrapper mimicking DirectionalSimilarity.forward.

    image_one / image_two : [B, C, H, W] float32  (NCHW, like PyTorch)
    caption_ids_*         : [B, L] int32 token ids
    params                : output of prepare_params()
    returns               : [B] float32 directional cosine similarity
    """
    B = image_one.shape[0]
    Fi, E, D = params["Fi"], params["E"], params["D"]
    tk, k_pad = params["tk"], params["k_pad"]
    kt = k_pad // tk

    # ---- glue (plain JAX): flatten images, embed + mean-pool tokens --------
    img1 = image_one.reshape(B, -1).astype(jnp.float32)
    img2 = image_two.reshape(B, -1).astype(jnp.float32)
    txt1 = jnp.mean(params["tok_embed"][caption_ids_one], axis=1)   # [B, E]
    txt2 = jnp.mean(params["tok_embed"][caption_ids_two], axis=1)   # [B, E]

    # Block-diagonal activation matrix (bf16): image rows see only w_img rows,
    # text rows see only w_txt rows, so ONE matmul produces all 4 features.
    x = jnp.zeros((4 * B, k_pad), jnp.bfloat16)
    x = x.at[0:2 * B, 0:Fi].set(
        jnp.concatenate([img1, img2], axis=0).astype(jnp.bfloat16))
    x = x.at[2 * B:4 * B, Fi:Fi + E].set(
        jnp.concatenate([txt1, txt2], axis=0).astype(jnp.bfloat16))

    w = params["w"]                                                  # [Kp, D]

    # Explicit VMEM budget: double-buffered x/w tiles + accumulator + margin.
    x_tile_bytes = 4 * B * tk * 2
    w_tile_bytes = tk * D * 2
    acc_bytes = 4 * B * D * 4
    vmem_limit = int(min(
        max(2 * (x_tile_bytes + w_tile_bytes) + acc_bytes + (4 << 20),
            16 << 20),
        64 << 20))   # stay under v7x's 64 MiB physical VMEM

    cost = pl.CostEstimate(
        flops=2 * (4 * B) * k_pad * D,
        transcendentals=5 * B,
        bytes_accessed=x.size * 2 + w.size * 2 + B * 4,
    )

    out = pl.pallas_call(
        _dirsim_kernel,
        out_shape=jax.ShapeDtypeStruct((B, 1), jnp.float32),
        grid_spec=pltpu.PrefetchScalarGridSpec(
            num_scalar_prefetch=0,
            grid=(kt,),
            in_specs=[
                pl.BlockSpec((4 * B, tk), lambda k: (0, k)),   # activation K-tile
                pl.BlockSpec((tk, D), lambda k: (k, 0)),       # weight K-tile
            ],
            out_specs=pl.BlockSpec((B, 1), lambda k: (0, 0)),
            scratch_shapes=[pltpu.VMEM((4 * B, D), jnp.float32)],
        ),
        compiler_params=pltpu.CompilerParams(
            dimension_semantics=("arbitrary",),
            vmem_limit_bytes=vmem_limit,
        ),
        cost_estimate=cost,
    )(x, w)

    return out[:, 0]


def _reference(image_one, image_two, caption_ids_one, caption_ids_two,
               tok_embed_table, w_img, w_txt):
    """Pure-JAX reference mirroring the kernel's bf16-matmul / f32-math."""
    B = image_one.shape[0]

    def bf(a):
        return a.astype(jnp.bfloat16).astype(jnp.float32)

    def enc_img(img):
        f = jnp.dot(bf(img.reshape(B, -1)), bf(w_img))
        return f / jnp.linalg.norm(f, axis=1, keepdims=True)

    def enc_txt(ids):
        pooled = jnp.mean(tok_embed_table[ids], axis=1)
        f = jnp.dot(bf(pooled), bf(w_txt))
        return f / jnp.linalg.norm(f, axis=1, keepdims=True)

    i1, i2 = enc_img(image_one), enc_img(image_two)
    t1, t2 = enc_txt(caption_ids_one), enc_txt(caption_ids_two)
    a, b = i2 - i1, t2 - t1
    num = jnp.sum(a * b, axis=1)
    na = jnp.maximum(jnp.linalg.norm(a, axis=1), 1e-8)
    nb = jnp.maximum(jnp.linalg.norm(b, axis=1), 1e-8)
    return num / (na * nb)


if __name__ == "__main__":
    # Small shapes consistent with the forward pass:
    # images [B=2, C=4, H=16, W=16], captions of length L=8,
    # token embedding dim E=32, projection (embed) dim D=64, vocab V=128.
    B, C, H, W = 2, 4, 16, 16
    L, E, D, V = 8, 32, 64, 128

    key = jax.random.PRNGKey(0)
    k1, k2, k3, k4, k5, k6, k7 = jax.random.split(key, 7)

    image_one = jax.random.normal(k1, (B, C, H, W), dtype=jnp.float32)
    image_two = jax.random.normal(k2, (B, C, H, W), dtype=jnp.float32)
    caption_ids_one = jax.random.randint(k3, (B, L), 0, V, dtype=jnp.int32)
    caption_ids_two = jax.random.randint(k4, (B, L), 0, V, dtype=jnp.int32)

    # Deterministic synthetic "encoder" parameters.
    tok_embed_table = jax.random.normal(k5, (V, E), dtype=jnp.float32) * 0.02
    w_img = jax.random.normal(k6, (C * H * W, D), dtype=jnp.float32) * 0.02
    w_txt = jax.random.normal(k7, (E, D), dtype=jnp.float32) * 0.02

    # One-time weight prep (bf16 cast + K concat/pad) outside the hot path.
    params = prepare_params(tok_embed_table, w_img, w_txt)

    sim = directional_similarity(image_one, image_two,
                                 caption_ids_one, caption_ids_two, params)
    jax.block_until_ready(sim)

    ref = _reference(image_one, image_two, caption_ids_one, caption_ids_two,
                     tok_embed_table, w_img, w_txt)

    assert sim.shape == (B,)
    assert bool(jnp.all(jnp.isfinite(sim)))
    assert bool(jnp.all(jnp.abs(sim) <= 1.0 + 1e-5))
    assert bool(jnp.allclose(sim, ref, atol=1e-3, rtol=1e-3))
    print("KERNEL_OK")
</pallas_src>

<mosaic_0001>
module attributes {stable_mosaic.version = 11 : i64} {
  func.func @_dirsim_kernel(%arg0: i32, %arg1: memref<8x1536xbf16, #tpu.memory_space<vmem>>, %arg2: memref<1536x64xbf16, #tpu.memory_space<vmem>>, %arg3: memref<2x1xf32, #tpu.memory_space<vmem>>, %arg4: memref<8x64xf32, #tpu.memory_space<vmem>>) attributes {dimension_semantics = [#tpu.dimension_semantics<arbitrary>], iteration_bounds = array<i64: 1>, scalar_prefetch = 0 : i64, scratch_operands = 1 : i64, tpu.core_type = #tpu.core_type<tc>, window_params = [{transform_indices = @transform_0, window_bounds = array<i64: 8, 1536>}, {transform_indices = @transform_1, window_bounds = array<i64: 1536, 64>}, {pipeline_mode = #tpu.pipeline_mode<synchronous>, transform_indices = @transform_2, window_bounds = array<i64: 2, 1>}]} {
    %c0_i32 = arith.constant 0 : i32
    %0 = arith.cmpi eq, %arg0, %c0_i32 : i32
    %1 = arith.extui %0 : i1 to i32
    %c0_i32_0 = arith.constant 0 : i32
    %2 = arith.cmpi ne, %1, %c0_i32_0 : i32
    scf.if %2 {
      %cst_10 = arith.constant 0.000000e+00 : f32
      %12 = vector.broadcast %cst_10 : f32 to vector<8x64xf32>
      %c0_11 = arith.constant 0 : index
      %c0_12 = arith.constant 0 : index
      %13 = vector.load %arg4[%c0_11, %c0_12] : memref<8x64xf32, #tpu.memory_space<vmem>>, vector<8x64xf32>
      tpu.vector_store %arg4[%c0_11, %c0_12], %12 {strides = array<i32>} : memref<8x64xf32, #tpu.memory_space<vmem>>, vector<8x64xf32>,
    } else {
    }
    %c0 = arith.constant 0 : index
    %c0_1 = arith.constant 0 : index
    %3 = vector.load %arg4[%c0, %c0_1] : memref<8x64xf32, #tpu.memory_space<vmem>>, vector<8x64xf32>
    %c0_2 = arith.constant 0 : index
    %c0_3 = arith.constant 0 : index
    %4 = vector.load %arg1[%c0_2, %c0_3] : memref<8x1536xbf16, #tpu.memory_space<vmem>>, vector<8x1536xbf16>
    %c0_4 = arith.constant 0 : index
    %c0_5 = arith.constant 0 : index
    %5 = vector.load %arg2[%c0_4, %c0_5] : memref<1536x64xbf16, #tpu.memory_space<vmem>>, vector<1536x64xbf16>
    %cst = arith.constant dense<0.000000e+00> : vector<8x64xf32>
    %6 = tpu.matmul %4, %5, %cst {dimension_numbers = #tpu.dot_dimension_numbers<[1], [0], [0], [1], [0, 0, 1, 1], [], []>} : vector<8x1536xbf16>, vector<1536x64xbf16>, vector<8x64xf32> -> vector<8x64xf32>
    %7 = arith.addf %3, %6 : vector<8x64xf32>
    %c0_6 = arith.constant 0 : index
    %c0_7 = arith.constant 0 : index
    %8 = vector.load %arg4[%c0_6, %c0_7] : memref<8x64xf32, #tpu.memory_space<vmem>>, vector<8x64xf32>
    tpu.vector_store %arg4[%c0_6, %c0_7], %7 {strides = array<i32>} : memref<8x64xf32, #tpu.memory_space<vmem>>, vector<8x64xf32>,
    %c0_i32_8 = arith.constant 0 : i32
    %9 = arith.cmpi eq, %arg0, %c0_i32_8 : i32
    %10 = arith.extui %9 : i1 to i32
    %c0_i32_9 = arith.constant 0 : i32
    %11 = arith.cmpi ne, %10, %c0_i32_9 : i32
    scf.if %11 {
      %c0_10 = arith.constant 0 : index
      %c0_11 = arith.constant 0 : index
      %12 = vector.load %arg4[%c0_10, %c0_11] : memref<8x64xf32, #tpu.memory_space<vmem>>, vector<8x64xf32>
      %13 = arith.mulf %12, %12 : vector<8x64xf32>
      %cst_12 = arith.constant dense<0.000000e+00> : vector<8xf32>
      %14 = vector.multi_reduction <add>, %13, %cst_12 [1] : vector<8x64xf32> to vector<8xf32>
      %15 = vector.shape_cast %14 : vector<8xf32> to vector<8x1xf32>
      %16 = math.rsqrt %15 : vector<8x1xf32>
      %17 = vector.broadcast %16 : vector<8x1xf32> to vector<8x64xf32>
      %18 = arith.mulf %12, %17 : vector<8x64xf32>
      %19 = vector.extract_strided_slice %18 {offsets = [2, 0], sizes = [2, 64], strides = [1, 1]} : vector<8x64xf32> to vector<2x64xf32>
      %20 = vector.extract_strided_slice %18 {offsets = [0, 0], sizes = [2, 64], strides = [1, 1]} : vector<8x64xf32> to vector<2x64xf32>
      %21 = arith.subf %19, %20 : vector<2x64xf32>
      %22 = vector.extract_strided_slice %18 {offsets = [6, 0], sizes = [2, 64], strides = [1, 1]} : vector<8x64xf32> to vector<2x64xf32>
      %23 = vector.extract_strided_slice %18 {offsets = [4, 0], sizes = [2, 64], strides = [1, 1]} : vector<8x64xf32> to vector<2x64xf32>
      %24 = arith.subf %22, %23 : vector<2x64xf32>
      %25 = arith.mulf %21, %24 : vector<2x64xf32>
      %26 = arith.mulf %21, %21 : vector<2x64xf32>
      %27 = arith.mulf %24, %24 : vector<2x64xf32>
      %28 = tpu.concatenate %25, %26, %27 in 0 : vector<2x64xf32>, vector<2x64xf32>, vector<2x64xf32> -> vector<6x64xf32>
      %cst_13 = arith.constant dense<0.000000e+00> : vector<6xf32>
      %29 = vector.multi_reduction <add>, %28, %cst_13 [1] : vector<6x64xf32> to vector<6xf32>
      %30 = vector.shape_cast %29 : vector<6xf32> to vector<6x1xf32>
      %31 = vector.extract_strided_slice %30 {offsets = [0, 0], sizes = [2, 1], strides = [1, 1]} : vector<6x1xf32> to vector<2x1xf32>
      %32 = vector.extract_strided_slice %30 {offsets = [2, 0], sizes = [2, 1], strides = [1, 1]} : vector<6x1xf32> to vector<2x1xf32>
      %cst_14 = arith.constant 9.99999993E-9 : f32
      %cst_15 = arith.constant 9.99999993E-9 : f32
      %33 = arith.mulf %cst_14, %cst_15 : f32
      %34 = vector.broadcast %33 : f32 to vector<2x1xf32>
      %35 = arith.maximumf %32, %34 : vector<2x1xf32>
      %36 = vector.extract_strided_slice %30 {offsets = [4, 0], sizes = [2, 1], strides = [1, 1]} : vector<6x1xf32> to vector<2x1xf32>
      %cst_16 = arith.constant 9.99999993E-9 : f32
      %cst_17 = arith.constant 9.99999993E-9 : f32
      %37 = arith.mulf %cst_16, %cst_17 : f32
      %38 = vector.broadcast %37 : f32 to vector<2x1xf32>
      %39 = arith.maximumf %36, %38 : vector<2x1xf32>
      %40 = arith.mulf %35, %39 : vector<2x1xf32>
      %41 = math.rsqrt %40 : vector<2x1xf32>
      %42 = arith.mulf %31, %41 : vector<2x1xf32>
      %c0_18 = arith.constant 0 : index
      %c0_19 = arith.constant 0 : index
      %43 = vector.load %arg3[%c0_18, %c0_19] : memref<2x1xf32, #tpu.memory_space<vmem>>, vector<2x1xf32>
      tpu.vector_store %arg3[%c0_18, %c0_19], %42 {strides = array<i32>} : memref<2x1xf32, #tpu.memory_space<vmem>>, vector<2x1xf32>,
    } else {
    }
    return
  }
  func.func @transform_0(%arg0: i32) -> (i32, i32) {
    %c0_i32 = arith.constant 0 : i32
    %c0_i32_0 = arith.constant 0 : i32
    return %c0_i32, %arg0 : i32, i32
  }
  func.func @transform_1(%arg0: i32) -> (i32, i32) {
    %c0_i32 = arith.constant 0 : i32
    %c0_i32_0 = arith.constant 0 : i32
    return %arg0, %c0_i32 : i32, i32
  }
  func.func @transform_2(%arg0: i32) -> (i32, i32) {
    %c0_i32 = arith.constant 0 : i32
    %c0_i32_0 = arith.constant 0 : i32
    %c0_i32_1 = arith.constant 0 : i32
    return %c0_i32, %c0_i32_0 : i32, i32
  }
}

</mosaic_0001>

<bundles_post_ra>
// kernel: tpu_custom_call.1
= control target key start
LH: loop header
LB: loop body
LE: loop exit
PB: predicated region body
PF: predicated region fallthrough
CT: control target
= control target key end

     0   :  { %vm16_vm0 = vcmask 523264   ;;  %vm1103_vm1 = vcmask 1041408   ;;  %vm1105_vm2 = vcmask 1043456   ;;  %vm1107_vm3 = vcmask 521216   ;;  %s1808_s1 = inlined_call_operand.vmem [shape: bf16[1536,64], index: 1, kind: input, shape index: {}]   ;;  %s1809_s0 = inlined_call_operand.vmem [shape: bf16[8,1536], index: 0, kind: input, shape index: {}]   ;;  %s1810_s2 = inlined_call_operand.vmem [shape: f32[2,1], index: 2, kind: output, shape index: {}]  }
   0x1   :  { %v1368_v0 = vld [vmem:[%s1808_s1 + $0x40] sm:$0xff]   ;;  %v1372_v4 = vld [vmem:[%s1808_s1 + $0x48] sm:$0xff]   ;;  %v1376_v8 = vld [vmem:[%s1808_s1 + $0x50] sm:$0xff]   ;;  %vm1121_vm4 = vcmask 1024  }
   0x2   :  { %v1369_v1 = vld [vmem:[%s1808_s1 + $0xc0] sm:$0xff]   ;;  %1235 = vmatprep.subr.bf16.mxu0 %v1368_v0  ;;  %v1373_v5 = vld [vmem:[%s1808_s1 + $0xc8] sm:$0xff]   ;;  %v1377_v9 = vld [vmem:[%s1808_s1 + $0xd0] sm:$0xff]  }
   0x3   :  { %v1370_v2 = vld [vmem:[%s1808_s1] sm:$0xff]   ;;  %1257 = vmatprep.subr.bf16.mxu1 %v1369_v1  ;;  %v1374_v6 = vld [vmem:[%s1808_s1 + $0x8] sm:$0xff]   ;;  %v1378_v10 = vld [vmem:[%s1808_s1 + $0x10] sm:$0xff]  }
   0x4   :  { %v1371_v3 = vld [vmem:[%s1808_s1 + $0x80] sm:$0xff]   ;;  %1236 = vmatpush3.bf16.msra.mxu0 %v1370_v2  ;;  %v1375_v7 = vld [vmem:[%s1808_s1 + $0x88] sm:$0xff]   ;;  %v1379_v11 = vld [vmem:[%s1808_s1 + $0x90] sm:$0xff]  }
   0x5   :  { %1258 = vmatpush3.bf16.msra.mxu1 %v1371_v3  ;;  %1237 = vmatprep.subr.bf16.mxu0 %v1372_v4  ;;  %v1380_v12 = vld [vmem:[%s1808_s1 + $0x58] sm:$0xff]   ;;  %v1384_v16 = vld [vmem:[%s1808_s1 + $0x60] sm:$0xff]   ;;  %v1388_v20 = vld [vmem:[%s1808_s1 + $0x68] sm:$0xff]  }
   0x6   :  { %1259 = vmatprep.subr.bf16.mxu1 %v1373_v5  ;;  %v1381_v13 = vld [vmem:[%s1808_s1 + $0xd8] sm:$0xff]   ;;  %v1385_v17 = vld [vmem:[%s1808_s1 + $0xe0] sm:$0xff]   ;;  %v1389_v21 = vld [vmem:[%s1808_s1 + $0xe8] sm:$0xff]  }
   0x7   :  { %v1382_v14 = vld [vmem:[%s1808_s1 + $0x18] sm:$0xff]   ;;  %v1386_v18 = vld [vmem:[%s1808_s1 + $0x20] sm:$0xff]   ;;  %v1390_v22 = vld [vmem:[%s1808_s1 + $0x28] sm:$0xff]  }
   0x8   :  { %1238 = vmatpush3.bf16.msra.mxu0 %v1374_v6  ;;  %v1383_v15 = vld [vmem:[%s1808_s1 + $0x98] sm:$0xff]   ;;  %v1387_v19 = vld [vmem:[%s1808_s1 + $0xa0] sm:$0xff]   ;;  %v1391_v23 = vld [vmem:[%s1808_s1 + $0xa8] sm:$0xff]  }
   0x9   :  { %1260 = vmatpush3.bf16.msra.mxu1 %v1375_v7  ;;  %1239 = vmatprep.subr.bf16.mxu0 %v1376_v8  ;;  %v1392_v24 = vld [vmem:[%s1808_s1 + $0x70] sm:$0xff]   ;;  %v1396_v28 = vld [vmem:[%s1808_s1 + $0x78] sm:$0xff]   ;;  %v19_v32 = vld [vmem:[%s1809_s0] sm:$0xff] }
   0xa   :  { %1261 = vmatprep.subr.bf16.mxu1 %v1377_v9  ;;  %v1393_v25 = vld [vmem:[%s1808_s1 + $0xf0] sm:$0xff]   ;;  %v1397_v29 = vld [vmem:[%s1808_s1 + $0xf8] sm:$0xff]   ;;  %v20_v33 = vld [vmem:[%s1809_s0 + $0x8] sm:$0xff]  ;;  %v1127_v34 = vcombine.low %v19_v32, %v19_v32  ;;  %v1128_v35 = vcombine.high %v19_v32, %v19_v32 }
   0xb   :  { %v1394_v26 = vld [vmem:[%s1808_s1 + $0x30] sm:$0xff]   ;;  %v1398_v30 = vld [vmem:[%s1808_s1 + $0x38] sm:$0xff]   ;;  %v1129_v36 = vcombine.low %v20_v33, %v20_v33  ;;  %v1130_v37 = vcombine.high %v20_v33, %v20_v33  ;;  %v1404_v38 = vld [vmem:[%s1808_s1 + $0x140] sm:$0xff]  }
   0xc   :  { %1240 = vmatpush3.bf16.msra.mxu0 %v1378_v10  ;;  %v1395_v27 = vld [vmem:[%s1808_s1 + $0xb0] sm:$0xff]   ;;  %v1399_v31 = vld [vmem:[%s1808_s1 + $0xb8] sm:$0xff]   ;;  %v1405_v39 = vld [vmem:[%s1808_s1 + $0x1c0] sm:$0xff]   ;;  %867 = vmatprep.mubr.bf16.mxu0 %v1128_v35 }
   0xd   :  { %1262 = vmatpush3.bf16.msra.mxu1 %v1379_v11  ;;  %1241 = vmatprep.subr.bf16.mxu0 %v1380_v12  ;;  %v1406_v40 = vld [vmem:[%s1808_s1 + $0x100] sm:$0xff]   ;;  %v1408_v42 = vld [vmem:[%s1808_s1 + $0x148] sm:$0xff]   ;;  %v1412_v46 = vld [vmem:[%s1808_s1 + $0x150] sm:$0xff]  }
   0xe   :  { %1263 = vmatprep.subr.bf16.mxu1 %v1381_v13  ;;  %907 = vmatprep.mubr.bf16.mxu1 %v1130_v37  ;;  %v1407_v41 = vld [vmem:[%s1808_s1 + $0x180] sm:$0xff]   ;;  %v1409_v43 = vld [vmem:[%s1808_s1 + $0x1c8] sm:$0xff]   ;;  %v1413_v47 = vld [vmem:[%s1808_s1 + $0x1d0] sm:$0xff]  }
   0xf   :  { %v1410_v44 = vld [vmem:[%s1808_s1 + $0x108] sm:$0xff]   ;;  %v1414_v48 = vld [vmem:[%s1808_s1 + $0x110] sm:$0xff]   ;;  %v1416_v50 = vld [vmem:[%s1808_s1 + $0x158] sm:$0xff]  }
  0x10   :  { %1242 = vmatpush3.bf16.msra.mxu0 %v1382_v14  ;;  %v1411_v45 = vld [vmem:[%s1808_s1 + $0x188] sm:$0xff]   ;;  %v1415_v49 = vld [vmem:[%s1808_s1 + $0x190] sm:$0xff]   ;;  %v1417_v51 = vld [vmem:[%s1808_s1 + $0x1d8] sm:$0xff]  }
  0x11   :  { %1264 = vmatpush3.bf16.msra.mxu1 %v1383_v15  ;;  %1243 = vmatprep.subr.bf16.mxu0 %v1384_v16  ;;  %v1418_v52 = vld [vmem:[%s1808_s1 + $0x118] sm:$0xff]   ;;  %v1420_v54 = vld [vmem:[%s1808_s1 + $0x160] sm:$0xff]   ;;  %v1424_v58 = vld [vmem:[%s1808_s1 + $0x168] sm:$0xff]  }
  0x12   :  { %1265 = vmatprep.subr.bf16.mxu1 %v1385_v17  ;;  %v1419_v53 = vld [vmem:[%s1808_s1 + $0x198] sm:$0xff]   ;;  %v1421_v55 = vld [vmem:[%s1808_s1 + $0x1e0] sm:$0xff]   ;;  %v1425_v59 = vld [vmem:[%s1808_s1 + $0x1e8] sm:$0xff]  }
  0x13   :  { %v1422_v56 = vld [vmem:[%s1808_s1 + $0x120] sm:$0xff]   ;;  %v1426_v60 = vld [vmem:[%s1808_s1 + $0x128] sm:$0xff]   ;;  %v1428_v62 = vld [vmem:[%s1808_s1 + $0x170] sm:$0xff]  }
  0x14   :  { %1244 = vmatpush3.bf16.msra.mxu0 %v1386_v18  ;;  %v1423_v57 = vld [vmem:[%s1808_s1 + $0x1a0] sm:$0xff]   ;;  %v1427_v61 = vld [vmem:[%s1808_s1 + $0x1a8] sm:$0xff]   ;;  %v1429_v63 = vld [vmem:[%s1808_s1 + $0x1f0] sm:$0xff]  }
  0x15   :  { %1266 = vmatpush3.bf16.msra.mxu1 %v1387_v19  ;;  %1245 = vmatprep.subr.bf16.mxu0 %v1388_v20  ;;  %v1430_v0 = vld [vmem:[%s1808_s1 + $0x130] sm:$0xff]   ;;  %v1432_v2 = vld [vmem:[%s1808_s1 + $0x178] sm:$0xff]   ;;  %v1440_v12 = vld [vmem:[%s1808_s1 + $0x240] sm:$0xff]  }
  0x16   :  { %1267 = vmatprep.subr.bf16.mxu1 %v1389_v21  ;;  %v1431_v1 = vld [vmem:[%s1808_s1 + $0x1b0] sm:$0xff]   ;;  %v1433_v3 = vld [vmem:[%s1808_s1 + $0x1f8] sm:$0xff]   ;;  %v1441_v13 = vld [vmem:[%s1808_s1 + $0x2c0] sm:$0xff]  }
  0x17   :  { %v1434_v4 = vld [vmem:[%s1808_s1 + $0x138] sm:$0xff]   ;;  %v21_v6 = vld [vmem:[%s1809_s0 + $0x10] sm:$0xff]  ;;  %v1442_v14 = vld [vmem:[%s1808_s1 + $0x200] sm:$0xff]  }
  0x18   :  { %1246 = vmatpush3.bf16.msra.mxu0 %v1390_v22  ;;  %v1435_v5 = vld [vmem:[%s1808_s1 + $0x1b8] sm:$0xff]   ;;  %v1131_v7 = vcombine.low %v21_v6, %v21_v6  ;;  %v1132_v8 = vcombine.high %v21_v6, %v21_v6  ;;  %v1443_v15 = vld [vmem:[%s1808_s1 + $0x280] sm:$0xff]   ;;  %v1444_v16 = vld [vmem:[%s1808_s1 + $0x248] sm:$0xff]  }
  0x19   :  { %1268 = vmatpush3.bf16.msra.mxu1 %v1391_v23  ;;  %1247 = vmatprep.subr.bf16.mxu0 %v1392_v24  ;;  %v22_v9 = vld [vmem:[%s1809_s0 + $0x18] sm:$0xff]  ;;  %v1445_v17 = vld [vmem:[%s1808_s1 + $0x2c8] sm:$0xff]   ;;  %v1448_v20 = vld [vmem:[%s1808_s1 + $0x250] sm:$0xff]  }
  0x1a   :  { %1269 = vmatprep.subr.bf16.mxu1 %v1393_v25  ;;  %v1133_v10 = vcombine.low %v22_v9, %v22_v9  ;;  %v1134_v11 = vcombine.high %v22_v9, %v22_v9  ;;  %v1446_v18 = vld [vmem:[%s1808_s1 + $0x208] sm:$0xff]   ;;  %v1449_v21 = vld [vmem:[%s1808_s1 + $0x2d0] sm:$0xff]   ;;  %v1452_v24 = vld [vmem:[%s1808_s1 + $0x258] sm:$0xff]  }
  0x1b   :  { %v1447_v19 = vld [vmem:[%s1808_s1 + $0x288] sm:$0xff]   ;;  %v1450_v22 = vld [vmem:[%s1808_s1 + $0x210] sm:$0xff]   ;;  %v1453_v25 = vld [vmem:[%s1808_s1 + $0x2d8] sm:$0xff]  }
  0x1c   :  { %1248 = vmatpush3.bf16.msra.mxu0 %v1394_v26  ;;  %v1451_v23 = vld [vmem:[%s1808_s1 + $0x290] sm:$0xff]   ;;  %v1454_v26 = vld [vmem:[%s1808_s1 + $0x218] sm:$0xff]   ;;  %v1460_v32 = vld [vmem:[%s1808_s1 + $0x268] sm:$0xff]  }
  0x1d   :  { %1270 = vmatpush3.bf16.msra.mxu1 %v1395_v27  ;;  %1249 = vmatprep.subr.bf16.mxu0 %v1396_v28  ;;  %v1455_v27 = vld [vmem:[%s1808_s1 + $0x298] sm:$0xff]   ;;  %v1456_v28 = vld [vmem:[%s1808_s1 + $0x260] sm:$0xff]   ;;  %v1461_v33 = vld [vmem:[%s1808_s1 + $0x2e8] sm:$0xff]  }
  0x1e   :  { %1271 = vmatprep.subr.bf16.mxu1 %v1397_v29  ;;  %v1457_v29 = vld [vmem:[%s1808_s1 + $0x2e0] sm:$0xff]   ;;  %v1463_v35 = vld [vmem:[%s1808_s1 + $0x2a8] sm:$0xff]   ;;  %v1465_v37 = vld [vmem:[%s1808_s1 + $0x2f0] sm:$0xff]  }
  0x20   :  { %1250 = vmatpush3.bf16.msra.mxu0 %v1398_v30  ;;  %v1458_v30 = vld [vmem:[%s1808_s1 + $0x220] sm:$0xff]  }
  0x21   :  { %1272 = vmatpush3.bf16.msra.mxu1 %v1399_v31  ;;  %1279 = vmatprep.subr.bf16.mxu0 %v1404_v38  ;;  %v1459_v31 = vld [vmem:[%s1808_s1 + $0x2a0] sm:$0xff]   ;;  %v1466_v38 = vld [vmem:[%s1808_s1 + $0x230] sm:$0xff]  }
  0x22   :  { %1301 = vmatprep.subr.bf16.mxu1 %v1405_v39  ;;  %v1467_v39 = vld [vmem:[%s1808_s1 + $0x2b0] sm:$0xff]  }
  0x23   :  { %868 = vmatmul.mubr.bf16.vlgmr.msra.gmra.mrb[0].mxu0 %v1127_v34  ;;  %v1462_v34 = vld [vmem:[%s1808_s1 + $0x228] sm:$0xff]  }
  0x24   :  { %908 = vmatmul.mubr.bf16.vlgmr.msra.gmra.mrb[0].mxu1 %v1129_v36  ;;  %1280 = vmatpush3.bf16.msra.mxu0 %v1406_v40  ;;  %v1464_v36 = vld [vmem:[%s1808_s1 + $0x270] sm:$0xff]   ;;  %v1468_v40 = vld [vmem:[%s1808_s1 + $0x278] sm:$0xff]  }
  0x25   :  { %1302 = vmatpush3.bf16.msra.mxu1 %v1407_v41  ;;  %1281 = vmatprep.subr.bf16.mxu0 %v1408_v42  ;;  %v1469_v41 = vld [vmem:[%s1808_s1 + $0x2f8] sm:$0xff]  }
  0x26   :  { %1303 = vmatprep.subr.bf16.mxu1 %v1409_v43  ;;  %947 = vmatprep.mubr.bf16.mxu0 %v1132_v8  ;;  %v1470_v42 = vld [vmem:[%s1808_s1 + $0x238] sm:$0xff]  }
  0x27   :  { %987 = vmatprep.mubr.bf16.mxu1 %v1134_v11  ;;  %v1471_v43 = vld [vmem:[%s1808_s1 + $0x2b8] sm:$0xff]  }
  0x28   :  { %1282 = vmatpush3.bf16.msra.mxu0 %v1410_v44  ;;  %v23_v44 = vld [vmem:[%s1809_s0 + $0x20] sm:$0xff] }
  0x29   :  { %1304 = vmatpush3.bf16.msra.mxu1 %v1411_v45  ;;  %1283 = vmatprep.subr.bf16.mxu0 %v1412_v46  ;;  %v24_v45 = vld [vmem:[%s1809_s0 + $0x28] sm:$0xff]  ;;  %v1135_v46 = vcombine.low %v23_v44, %v23_v44 }
  0x2a   :  { %1305 = vmatprep.subr.bf16.mxu1 %v1413_v47  ;;  %v1136_v47 = vcombine.high %v23_v44, %v23_v44 }
  0x2c   :  { %1284 = vmatpush3.bf16.msra.mxu0 %v1414_v48  ;;  %v1137_v48 = vcombine.low %v24_v45, %v24_v45 }
  0x2d   :  { %1306 = vmatpush3.bf16.msra.mxu1 %v1415_v49  ;;  %1285 = vmatprep.subr.bf16.mxu0 %v1416_v50  ;;  %v1138_v49 = vcombine.high %v24_v45, %v24_v45  ;;  %v1480_v50 = vmov 0.0  }
  0x2e   :  { %1307 = vmatprep.subr.bf16.mxu1 %v1417_v51  ;;  %17 = vst.msk [vmem:[#allocation2] sm:$0xff] %vm16_vm0, %v1480_v50 }
  0x30   :  { %1286 = vmatpush3.bf16.msra.mxu0 %v1418_v52 }
  0x31   :  { %1308 = vmatpush3.bf16.msra.mxu1 %v1419_v53  ;;  %1287 = vmatprep.subr.bf16.mxu0 %v1420_v54 }
  0x32   :  { %1309 = vmatprep.subr.bf16.mxu1 %v1421_v55 }
  0x34   :  { %1288 = vmatpush3.bf16.msra.mxu0 %v1422_v56 }
  0x35   :  { %1310 = vmatpush3.bf16.msra.mxu1 %v1423_v57  ;;  %1289 = vmatprep.subr.bf16.mxu0 %v1424_v58 }
  0x36   :  { %1311 = vmatprep.subr.bf16.mxu1 %v1425_v59 }
  0x38   :  { %1290 = vmatpush3.bf16.msra.mxu0 %v1426_v60 }
  0x39   :  { %1312 = vmatpush3.bf16.msra.mxu1 %v1427_v61  ;;  %1291 = vmatprep.subr.bf16.mxu0 %v1428_v62 }
  0x3a   :  { %1313 = vmatprep.subr.bf16.mxu1 %v1429_v63 }
  0x3c   :  { %1292 = vmatpush3.bf16.msra.mxu0 %v1430_v0 }
  0x3d   :  { %1314 = vmatpush3.bf16.msra.mxu1 %v1431_v1  ;;  %1293 = vmatprep.subr.bf16.mxu0 %v1432_v2 }
  0x3e   :  { %1315 = vmatprep.subr.bf16.mxu1 %v1433_v3 }
  0x40   :  { %1294 = vmatpush3.bf16.msra.mxu0 %v1434_v4 }
  0x41   :  { %1316 = vmatpush3.bf16.msra.mxu1 %v1435_v5  ;;  %1323 = vmatprep.subr.bf16.mxu0 %v1440_v12 }
  0x42   :  { %1345 = vmatprep.subr.bf16.mxu1 %v1441_v13 }
  0x43   :  { %948 = vmatmul.mubr.bf16.vlgmr.msra.gmra.mrb[4].mxu0 %v1131_v7 }
  0x44   :  { %988 = vmatmul.mubr.bf16.vlgmr.msra.gmra.mrb[4].mxu1 %v1133_v10  ;;  %1324 = vmatpush3.bf16.msra.mxu0 %v1442_v14 }
  0x45   :  { %1346 = vmatpush3.bf16.msra.mxu1 %v1443_v15  ;;  %1325 = vmatprep.subr.bf16.mxu0 %v1444_v16 }
  0x46   :  { %1347 = vmatprep.subr.bf16.mxu1 %v1445_v17  ;;  %1027 = vmatprep.mubr.bf16.mxu0 %v1136_v47 }
  0x47   :  { %1067 = vmatprep.mubr.bf16.mxu1 %v1138_v49 }
  0x48   :  { %1326 = vmatpush3.bf16.msra.mxu0 %v1446_v18 }
  0x49   :  { %1348 = vmatpush3.bf16.msra.mxu1 %v1447_v19  ;;  %1327 = vmatprep.subr.bf16.mxu0 %v1448_v20 }
  0x4a   :  { %1349 = vmatprep.subr.bf16.mxu1 %v1449_v21  ;;  %v18_v21 = vld [vmem:[#allocation2] sm:$0xff] }
  0x4c   :  { %1328 = vmatpush3.bf16.msra.mxu0 %v1450_v22 }
  0x4d   :  { %1350 = vmatpush3.bf16.msra.mxu1 %v1451_v23  ;;  %1329 = vmatprep.subr.bf16.mxu0 %v1452_v24 }
  0x4e   :  { %1351 = vmatprep.subr.bf16.mxu1 %v1453_v25 }
  0x50   :  { %1330 = vmatpush3.bf16.msra.mxu0 %v1454_v26 }
  0x51   :  { %1352 = vmatpush3.bf16.msra.mxu1 %v1455_v27  ;;  %1331 = vmatprep.subr.bf16.mxu0 %v1456_v28 }
  0x52   :  { %1353 = vmatprep.subr.bf16.mxu1 %v1457_v29 }
  0x54   :  { %1332 = vmatpush3.bf16.msra.mxu0 %v1458_v30 }
  0x55   :  { %1354 = vmatpush3.bf16.msra.mxu1 %v1459_v31  ;;  %1333 = vmatprep.subr.bf16.mxu0 %v1460_v32 }
  0x56   :  { %1355 = vmatprep.subr.bf16.mxu1 %v1461_v33 }
  0x58   :  { %1334 = vmatpush3.bf16.msra.mxu0 %v1462_v34 }
  0x59   :  { %1356 = vmatpush3.bf16.msra.mxu1 %v1463_v35  ;;  %1335 = vmatprep.subr.bf16.mxu0 %v1464_v36 }
  0x5a   :  { %1357 = vmatprep.subr.bf16.mxu1 %v1465_v37 }
  0x5c   :  { %1336 = vmatpush3.bf16.msra.mxu0 %v1466_v38 }
  0x5d   :  { %1358 = vmatpush3.bf16.msra.mxu1 %v1467_v39  ;;  %1337 = vmatprep.subr.bf16.mxu0 %v1468_v40 }
  0x5e   :  { %1359 = vmatprep.subr.bf16.mxu1 %v1469_v41 }
  0x60   :  { %1338 = vmatpush3.bf16.msra.mxu0 %v1470_v42 }
  0x61   :  { %1360 = vmatpush3.bf16.msra.mxu1 %v1471_v43 }
  0x63   :  { %1028 = vmatmul.mubr.bf16.vlgmr.msra.gmra.mrb[8].mxu0 %v1135_v46 }
  0x64   :  { %1068 = vmatmul.mubr.bf16.vlgmr.msra.gmra.mrb[8].mxu1 %v1137_v48 }
  0xf6   :  { %v1251_v51 = vpop.f32.mrb[0].mxu0 }
  0xf7   :  { %v1273_v52 = vpop.f32.mrb[0].mxu1  ;;  %v1252_v53 = vpop.f32.mrb[1].mxu0 }
  0xf8   :  { %v1274_v54 = vpop.f32.mrb[1].mxu1  ;;  %v1253_v55 = vadd.f32 %v1252_v53, %v1251_v51  ;;  %v1254_v57 = vpop.f32.mrb[2].mxu0 }
  0xf9   :  { %v1275_v56 = vadd.f32 %v1274_v54, %v1273_v52  ;;  %v1276_v58 = vpop.f32.mrb[2].mxu1  ;;  %v1255_v59 = vpop.f32.mrb[3].mxu0 }
  0xfa   :  { %v1277_v60 = vpop.f32.mrb[3].mxu1 }
  0xfb   :  { %v910_v61 = vadd.f32 %v1275_v56, %v1253_v55 }
 0x116   :  { %v1295_v62 = vpop.f32.mrb[4].mxu0 }
 0x117   :  { %v1317_v63 = vpop.f32.mrb[4].mxu1  ;;  %v1296_v0 = vpop.f32.mrb[5].mxu0 }
 0x118   :  { %v1318_v1 = vpop.f32.mrb[5].mxu1  ;;  %v1297_v2 = vadd.f32 %v1296_v0, %v1295_v62  ;;  %v1298_v4 = vpop.f32.mrb[6].mxu0 }
 0x119   :  { %v1319_v3 = vadd.f32 %v1318_v1, %v1317_v63  ;;  %v1320_v5 = vpop.f32.mrb[6].mxu1  ;;  %v1299_v6 = vpop.f32.mrb[7].mxu0 }
 0x11a   :  { %v1321_v7 = vpop.f32.mrb[7].mxu1  ;;  %v950_v8 = vadd.f32 %v1297_v2, %v910_v61 }
 0x11c   :  { %v990_v9 = vadd.f32 %v1319_v3, %v950_v8 }
 0x136   :  { %v1339_v10 = vpop.f32.mrb[8].mxu0 }
 0x137   :  { %v1361_v11 = vpop.f32.mrb[8].mxu1  ;;  %v1340_v12 = vpop.f32.mrb[9].mxu0 }
 0x138   :  { %v1341_v13 = vadd.f32 %v1340_v12, %v1339_v10  ;;  %v1362_v14 = vpop.f32.mrb[9].mxu1  ;;  %v1342_v15 = vpop.f32.mrb[10].mxu0 }
 0x139   :  { %v1363_v16 = vadd.f32 %v1362_v14, %v1361_v11  ;;  %v1364_v17 = vpop.f32.mrb[10].mxu1  ;;  %v1343_v18 = vpop.f32.mrb[11].mxu0 }
 0x13a   :  { %v1030_v19 = vadd.f32 %v1341_v13, %v990_v9  ;;  %v1365_v20 = vpop.f32.mrb[11].mxu1 }
 0x13c   :  { %v1070_v22 = vadd.f32 %v1363_v16, %v1030_v19 }
 0x13e   :  { %v1075_v23 = vadd.f32 %v1070_v22, %v18_v21 }
 0x140   :  { %1077 = vst.msk [vmem:[#allocation2] sm:$0xff] %vm16_vm0, %v1075_v23 }
 0x147   :  { %v1081_v24 = vld [vmem:[#allocation2] sm:$0xff] }
 0x148   :  { %v1082_v25 = vmul.f32 %v1081_v24, %v1081_v24 }
 0x14a   :  { %v1083_v26 = vsel %vm16_vm0, %v1082_v25, 0.0 }
 0x14b   :  { %1084 = vadd.xlane.f32.xlu0 %v1083_v26 }
 0x1d8   :  { %v1085_v27 = vpop.xlane.xlu0 %1084 }
 0x1d9   :  { %1476 = vrsqrt.f32 %v1085_v27 }
 0x1e3   :  { %v1477_v28 = vpop.eup %1476 }
 0x1e4   :  { %v1087_v29 = vmul.f32 %v1477_v28, %v1081_v24 }
 0x1e6   :  { %v1089_v30 = vrot.slane %v1087_v29, 6 }
 0x1e8   :  { %v1091_v31 = vsub.f32 %v1087_v29, %v1089_v30 }
 0x1ea   :  { %v1093_v32 = vrot.slane %v1091_v31, 4  ;;  %v1096_v33 = vmul.f32 %v1091_v31, %v1091_v31 }
 0x1ec   :  { %v1095_v34 = vmul.f32 %v1093_v32, %v1091_v31  ;;  %v1101_v36 = vrot.slane %v1096_v33, 2 }
 0x1ee   :  { %v1098_v35 = vrot.slane %v1095_v34, 2 }
 0x1f0   :  { %v1104_v37 = vsel %vm1103_vm1, %v1098_v35, %v1096_v33 }
 0x1f1   :  { %v1106_v38 = vsel %vm1105_vm2, %v1104_v37, %v1101_v36 }
 0x1f2   :  { %v1108_v39 = vsel %vm1107_vm3, %v1106_v38, 0.0 }
 0x1f3   :  { %1109 = vadd.xlane.f32.xlu0 %v1108_v39 }
 0x280   :  { %v1110_v40 = vpop.xlane.xlu0 %1109 }
 0x281   :  { %v1111_v41 = vmax.f32 %v1110_v40, 1e-16 }
 0x283   :  { %v1113_v42 = vrot.slane %v1111_v41, 2 }
 0x285   :  { %v1115_v43 = vmul.f32 %v1113_v42, %v1111_v41 }
 0x287   :  { %1478 = vrsqrt.f32 %v1115_v43 }
 0x291   :  { %v1479_v44 = vpop.eup %1478 }
 0x292   :  { %v1118_v45 = vrot.slane %v1479_v44, 2 }
 0x294   :  { %v1120_v46 = vmul.f32 %v1118_v45, %v1110_v40 }
 0x296   :  { %1122 = vst.msk [vmem:[%s1810_s2] sm:$0x3] %vm1121_vm4, %v1120_v46 }

</bundles_post_ra>
